<compile_context>
chip_gen: v6e
topology: v6e:2x2x1
jax: 0.10.0
libtpu: 0.0.40
codegen_flags: <defaults>
</compile_context>

<pallas_src>
import functools

import numpy as np
import jax
import jax.numpy as jnp
from jax import lax
from jax.experimental import pallas as pl
from jax.experimental.pallas import tpu as pltpu


def _learnable_upsample_kernel(x_ref, w_up_e_ref, w_up_o_ref, w_rf_ref, shift_ref,
                               out_e_ref, out_o_ref, *, L):
    # x_ref:      (1, C, N)  raw input, batch folded into lanes: lane p = b*L + j
    #                        (lanes >= B_tile*L are zero padding, N % 128 == 0)
    # w_up_e_ref: (C, 2C)    [Wk1 | Wk3] -> even outputs   (Wk[co,ci] = W_up[ci,co,k])
    # w_up_o_ref: (C, 2C)    [Wk2 | Wk0] -> odd outputs
    # w_rf_ref:   (C, 3C)    [R0 | R1 | R2] refine taps, BN scale folded into rows
    # shift_ref:  (C, 1)     BN shift (beta - mean * scale)
    # out_e_ref:  (1, C, N)  outputs at even positions t = 2j
    # out_o_ref:  (1, C, N)  outputs at odd  positions t = 2j + 1
    C = out_e_ref.shape[1]
    N = out_e_ref.shape[2]

    x = x_ref[0]                                                  # (C, N)

    # Per-batch-segment edge masks: lane p holds position j = p % L of a sample.
    j = lax.broadcasted_iota(jnp.int32, (C, N), 1) % L
    not_first = (j != 0).astype(jnp.float32)
    not_last = (j != (L - 1)).astype(jnp.float32)

    def shift_prev(a):   # a[:, p-1], zero at the first position of each segment
        return pltpu.roll(a, shift=1, axis=1) * not_first

    def shift_next(a):   # a[:, p+1], zero at the last position of each segment
        return pltpu.roll(a, shift=N - 1, axis=1) * not_last

    # --- ConvTranspose1d(k=4, stride=2, pad=1): even/odd parity decomposition,
    #     one fused wide-contraction (K = 2C) MXU matmul per parity.
    y_e = jnp.dot(w_up_e_ref[...], jnp.concatenate([x, shift_prev(x)], axis=0),
                  preferred_element_type=jnp.float32)
    y_o = jnp.dot(w_up_o_ref[...], jnp.concatenate([x, shift_next(x)], axis=0),
                  preferred_element_type=jnp.float32)

    # --- SiLU (sigmoid lands on the EUP slot) ---
    y_e = y_e * jax.nn.sigmoid(y_e)
    y_o = y_o * jax.nn.sigmoid(y_o)

    # --- refine Conv1d(k=3, pad=1) on the interleaved stream, parity-split:
    #       y2[2j]   = R0 @ y_o[j-1] + R1 @ y_e[j] + R2 @ y_o[j]
    #       y2[2j+1] = R0 @ y_e[j]   + R1 @ y_o[j] + R2 @ y_e[j+1]
    #     one fused K = 3C matmul per parity; BN scale already folded into R.
    w_rf = w_rf_ref[...]
    shift = shift_ref[...]
    out_e_ref[0] = jnp.dot(w_rf, jnp.concatenate([shift_prev(y_o), y_e, y_o], axis=0),
                           preferred_element_type=jnp.float32) + shift
    out_o_ref[0] = jnp.dot(w_rf, jnp.concatenate([y_e, y_o, shift_next(y_e)], axis=0),
                           preferred_element_type=jnp.float32) + shift


def _choose_b_tile(B, L):
    """Smallest divisor of B whose lane count B_tile*L reaches 128 (else B)."""
    best = B
    for d in range(1, B + 1):
        if B % d == 0:
            if d * L >= 128:
                return d
            best = d
    return best


def learnable_upsample(x, w_up, w_refine, gamma, beta, run_mean, run_var,
                       scale_factor=2, eps=1e-5):
    """x: (B, C, L) float32. Returns (B, C, L*scale_factor) float32 (eval mode)."""
    if scale_factor != 2:
        raise NotImplementedError("even/odd parity decomposition assumes stride 2")
    B, C, L = x.shape
    assert w_up.shape[2] == 4 and w_refine.shape[2] == 3
    T = 2 * L                                  # (L-1)*2 - 2*1 + 4

    f32 = jnp.float32
    x = x.astype(f32)

    # --- equivalent per-parity up-conv weights --------------------------------
    # scatter: y[co, 2s-1+k] += x[ci, s] * W_up[ci, co, k]
    #   t even = 2j   <- k=1 (s=j),   k=3 (s=j-1)
    #   t odd  = 2j+1 <- k=2 (s=j),   k=0 (s=j+1)
    wk = jnp.transpose(w_up.astype(f32), (2, 1, 0))        # (k, co, ci)
    w_up_even = jnp.concatenate([wk[1], wk[3]], axis=1)    # (C, 2C) acts on [x ; x_prev]
    w_up_odd = jnp.concatenate([wk[2], wk[0]], axis=1)     # (C, 2C) acts on [x ; x_next]

    # --- refine conv weights with BatchNorm (eval) scale folded in ------------
    scale = (gamma / jnp.sqrt(run_var + eps)).astype(f32)
    shift = (beta.astype(f32) - run_mean.astype(f32) * scale).reshape(C, 1)
    w_rf = w_refine.astype(f32) * scale[:, None, None]     # (co, ci, k), row-scaled
    w_rf = jnp.concatenate([w_rf[:, :, 0], w_rf[:, :, 1], w_rf[:, :, 2]], axis=1)  # (C, 3C)

    # --- batch folded into lanes (lane-dense), padded to a multiple of 128 ----
    B_tile = _choose_b_tile(B, L)
    G = B // B_tile
    n_real = B_tile * L
    N = max(128, ((n_real + 127) // 128) * 128)
    xg = x.reshape(G, B_tile, C, L).transpose(0, 2, 1, 3).reshape(G, C, n_real)
    xg = jnp.pad(xg, ((0, 0), (0, 0), (0, N - n_real)))    # (G, C, N)

    kernel = functools.partial(_learnable_upsample_kernel, L=L)
    out_e, out_o = pl.pallas_call(
        kernel,
        out_shape=(jax.ShapeDtypeStruct((G, C, N), f32),
                   jax.ShapeDtypeStruct((G, C, N), f32)),
        grid=(G,),
        in_specs=[
            pl.BlockSpec((1, C, N), lambda g: (g, 0, 0)),
            pl.BlockSpec((C, 2 * C), lambda g: (0, 0)),
            pl.BlockSpec((C, 2 * C), lambda g: (0, 0)),
            pl.BlockSpec((C, 3 * C), lambda g: (0, 0)),
            pl.BlockSpec((C, 1), lambda g: (0, 0)),
        ],
        out_specs=(pl.BlockSpec((1, C, N), lambda g: (g, 0, 0)),
                   pl.BlockSpec((1, C, N), lambda g: (g, 0, 0))),
        compiler_params=pltpu.CompilerParams(dimension_semantics=("parallel",)),
    )(xg, w_up_even, w_up_odd, w_rf, shift)

    # --- interleave parities and unfold batch (layout plumbing, wrapper-side) -
    y = jnp.stack([out_e[:, :, :n_real], out_o[:, :, :n_real]], axis=-1)  # (G,C,n_real,2)
    y = y.reshape(G, C, B_tile, L, 2).transpose(0, 2, 1, 3, 4).reshape(B, C, T)
    return y


def _reference_numpy(x, w_up, w_refine, gamma, beta, run_mean, run_var,
                     scale_factor=2, eps=1e-5):
    """Independent, loop-based reference of the PyTorch forward (eval mode)."""
    x = np.asarray(x, np.float64)
    w_up = np.asarray(w_up, np.float64)
    w_refine = np.asarray(w_refine, np.float64)
    gamma = np.asarray(gamma, np.float64)
    beta = np.asarray(beta, np.float64)
    run_mean = np.asarray(run_mean, np.float64)
    run_var = np.asarray(run_var, np.float64)

    B, C, L = x.shape
    K, pad = w_up.shape[2], 1
    T = (L - 1) * scale_factor - 2 * pad + K

    # ConvTranspose1d (scatter): out[b, co, t] += x[b, ci, s] * W[ci, co, k]
    y1 = np.zeros((B, C, T))
    for b in range(B):
        for s in range(L):
            for k in range(K):
                t = s * scale_factor - pad + k
                if 0 <= t < T:
                    y1[b, :, t] += w_up[:, :, k].T @ x[b, :, s]

    # SiLU: z * sigmoid(z)
    y1 = y1 / (1.0 + np.exp(-y1))

    # refine Conv1d, kernel 3, padding 1
    Kr, padr = w_refine.shape[2], 1
    y2 = np.zeros((B, C, T))
    for b in range(B):
        for t in range(T):
            for k in range(Kr):
                s = t - padr + k
                if 0 <= s < T:
                    y2[b, :, t] += w_refine[:, :, k] @ y1[b, :, s]

    # BatchNorm1d (eval) affine; Dropout = identity (eval)
    scale = gamma / np.sqrt(run_var + eps)
    shift = beta - run_mean * scale
    return y2 * scale[None, :, None] + shift[None, :, None]


if __name__ == "__main__":
    B, C, L = 2, 8, 16
    scale_factor = 2

    key = jax.random.PRNGKey(0)
    kx, k1, k2, k3, k4, k5, k6 = jax.random.split(key, 7)

    x = jax.random.normal(kx, (B, C, L), jnp.float32)
    w_up = jax.random.normal(k1, (C, C, 4), jnp.float32) * 0.2      # ConvTranspose1d.weight (in, out, k)
    w_refine = jax.random.normal(k2, (C, C, 3), jnp.float32) * 0.2  # Conv1d.weight (out, in, k)
    gamma = 1.0 + 0.1 * jax.random.normal(k3, (C,), jnp.float32)    # BatchNorm weight
    beta = 0.1 * jax.random.normal(k4, (C,), jnp.float32)           # BatchNorm bias
    run_mean = 0.1 * jax.random.normal(k5, (C,), jnp.float32)       # running_mean
    run_var = jax.random.uniform(k6, (C,), jnp.float32, 0.5, 1.5)   # running_var

    out = learnable_upsample(x, w_up, w_refine, gamma, beta, run_mean, run_var,
                             scale_factor=scale_factor)
    out = jax.block_until_ready(out)

    ref = _reference_numpy(x, w_up, w_refine, gamma, beta, run_mean, run_var,
                           scale_factor=scale_factor)
    np.testing.assert_allclose(np.asarray(out), ref, rtol=1e-4, atol=1e-4)

    print("KERNEL_OK")
</pallas_src>

<mosaic_0001>
module attributes {stable_mosaic.version = 11 : i64} {
  func.func @_learnable_upsample_kernel(%arg0: i32, %arg1: memref<1x8x128xf32, #tpu.memory_space<vmem>>, %arg2: memref<8x16xf32, #tpu.memory_space<vmem>>, %arg3: memref<8x16xf32, #tpu.memory_space<vmem>>, %arg4: memref<8x24xf32, #tpu.memory_space<vmem>>, %arg5: memref<8x1xf32, #tpu.memory_space<vmem>>, %arg6: memref<1x8x128xf32, #tpu.memory_space<vmem>>, %arg7: memref<1x8x128xf32, #tpu.memory_space<vmem>>) attributes {dimension_semantics = [#tpu.dimension_semantics<parallel>], iteration_bounds = array<i64: 1>, scalar_prefetch = 0 : i64, scratch_operands = 0 : i64, tpu.core_type = #tpu.core_type<tc>, window_params = [{transform_indices = @transform_0, window_bounds = array<i64: 1, 8, 128>}, {pipeline_mode = #tpu.pipeline_mode<synchronous>, transform_indices = @transform_1, window_bounds = array<i64: 8, 16>}, {pipeline_mode = #tpu.pipeline_mode<synchronous>, transform_indices = @transform_2, window_bounds = array<i64: 8, 16>}, {pipeline_mode = #tpu.pipeline_mode<synchronous>, transform_indices = @transform_3, window_bounds = array<i64: 8, 24>}, {pipeline_mode = #tpu.pipeline_mode<synchronous>, transform_indices = @transform_4, window_bounds = array<i64: 8, 1>}, {transform_indices = @transform_5, window_bounds = array<i64: 1, 8, 128>}, {transform_indices = @transform_6, window_bounds = array<i64: 1, 8, 128>}]} {
    %c0 = arith.constant 0 : index
    %c0_0 = arith.constant 0 : index
    %c0_1 = arith.constant 0 : index
    %0 = vector.load %arg1[%c0, %c0_0, %c0_1] : memref<1x8x128xf32, #tpu.memory_space<vmem>>, vector<1x8x128xf32>
    %1 = vector.shape_cast %0 : vector<1x8x128xf32> to vector<8x128xf32>
    %2 = tpu.iota {dimensions = array<i32: 1>} : vector<8x128xi32>
    %c16_i32 = arith.constant 16 : i32
    %c0_i32 = arith.constant 0 : i32
    %3 = arith.cmpi eq, %c16_i32, %c0_i32 : i32
    %c1_i32 = arith.constant 1 : i32
    %4 = arith.select %3, %c1_i32, %c16_i32 : i32
    %5 = vector.broadcast %4 : i32 to vector<8x128xi32>
    %6 = arith.remsi %2, %5 : vector<8x128xi32>
    %c0_i32_2 = arith.constant 0 : i32
    %7 = vector.broadcast %c0_i32_2 : i32 to vector<8x128xi32>
    %8 = arith.cmpi ne, %6, %7 : vector<8x128xi32>
    %c0_i32_3 = arith.constant 0 : i32
    %9 = vector.broadcast %c0_i32_3 : i32 to vector<8x128xi32>
    %10 = arith.cmpi slt, %6, %9 : vector<8x128xi32>
    %c0_i32_4 = arith.constant 0 : i32
    %11 = arith.cmpi slt, %4, %c0_i32_4 : i32
    %12 = vector.broadcast %11 : i1 to vector<8x128xi1>
    %13 = vector.broadcast %12 : vector<8x128xi1> to vector<8x128xi1>
    %14 = arith.xori %10, %13 : vector<8x128xi1>
    %15 = arith.andi %14, %8 : vector<8x128xi1>
    %16 = vector.broadcast %4 : i32 to vector<8x128xi32>
    %17 = arith.addi %6, %16 : vector<8x128xi32>
    %18 = arith.select %15, %17, %6 : vector<8x128xi1>, vector<8x128xi32>
    %c0_i32_5 = arith.constant 0 : i32
    %19 = vector.broadcast %c0_i32_5 : i32 to vector<8x128xi32>
    %20 = arith.cmpi ne, %18, %19 : vector<8x128xi32>
    %21 = arith.extui %20 : vector<8x128xi1> to vector<8x128xi32>
    %22 = arith.sitofp %21 : vector<8x128xi32> to vector<8x128xf32>
    %c15_i32 = arith.constant 15 : i32
    %23 = vector.broadcast %c15_i32 : i32 to vector<8x128xi32>
    %24 = arith.cmpi ne, %18, %23 : vector<8x128xi32>
    %25 = arith.extui %24 : vector<8x128xi1> to vector<8x128xi32>
    %26 = arith.sitofp %25 : vector<8x128xi32> to vector<8x128xf32>
    %c0_6 = arith.constant 0 : index
    %c0_7 = arith.constant 0 : index
    %27 = vector.load %arg2[%c0_6, %c0_7] : memref<8x16xf32, #tpu.memory_space<vmem>>, vector<8x16xf32>
    %c1_i32_8 = arith.constant 1 : i32
    %28 = tpu.dynamic_rotate %1 by %c1_i32_8 dim 1 : vector<8x128xf32>, i32 -> vector<8x128xf32>
    %29 = arith.mulf %28, %22 : vector<8x128xf32>
    %30 = tpu.concatenate %1, %29 in 0 : vector<8x128xf32>, vector<8x128xf32> -> vector<16x128xf32>
    %cst = arith.constant dense<0.000000e+00> : vector<8x128xf32>
    %31 = tpu.matmul %27, %30, %cst {dimension_numbers = #tpu.dot_dimension_numbers<[1], [0], [0], [1], [0, 0, 1, 1], [], []>} : vector<8x16xf32>, vector<16x128xf32>, vector<8x128xf32> -> vector<8x128xf32>
    %c0_9 = arith.constant 0 : index
    %c0_10 = arith.constant 0 : index
    %32 = vector.load %arg3[%c0_9, %c0_10] : memref<8x16xf32, #tpu.memory_space<vmem>>, vector<8x16xf32>
    %c127_i32 = arith.constant 127 : i32
    %33 = tpu.dynamic_rotate %1 by %c127_i32 dim 1 : vector<8x128xf32>, i32 -> vector<8x128xf32>
    %34 = arith.mulf %33, %26 : vector<8x128xf32>
    %35 = tpu.concatenate %1, %34 in 0 : vector<8x128xf32>, vector<8x128xf32> -> vector<16x128xf32>
    %cst_11 = arith.constant dense<0.000000e+00> : vector<8x128xf32>
    %36 = tpu.matmul %32, %35, %cst_11 {dimension_numbers = #tpu.dot_dimension_numbers<[1], [0], [0], [1], [0, 0, 1, 1], [], []>} : vector<8x16xf32>, vector<16x128xf32>, vector<8x128xf32> -> vector<8x128xf32>
    %37 = arith.negf %31 : vector<8x128xf32>
    %38 = math.exp %37 : vector<8x128xf32>
    %cst_12 = arith.constant 1.000000e+00 : f32
    %39 = vector.broadcast %cst_12 : f32 to vector<8x128xf32>
    %40 = arith.addf %39, %38 : vector<8x128xf32>
    %41 = arith.divf %39, %40 : vector<8x128xf32>
    %42 = arith.mulf %31, %41 : vector<8x128xf32>
    %43 = arith.negf %36 : vector<8x128xf32>
    %44 = math.exp %43 : vector<8x128xf32>
    %cst_13 = arith.constant 1.000000e+00 : f32
    %45 = vector.broadcast %cst_13 : f32 to vector<8x128xf32>
    %46 = arith.addf %45, %44 : vector<8x128xf32>
    %47 = arith.divf %45, %46 : vector<8x128xf32>
    %48 = arith.mulf %36, %47 : vector<8x128xf32>
    %c0_14 = arith.constant 0 : index
    %c0_15 = arith.constant 0 : index
    %49 = vector.load %arg4[%c0_14, %c0_15] : memref<8x24xf32, #tpu.memory_space<vmem>>, vector<8x24xf32>
    %c0_16 = arith.constant 0 : index
    %c0_17 = arith.constant 0 : index
    %50 = vector.load %arg5[%c0_16, %c0_17] : memref<8x1xf32, #tpu.memory_space<vmem>>, vector<8x1xf32>
    %c1_i32_18 = arith.constant 1 : i32
    %51 = tpu.dynamic_rotate %48 by %c1_i32_18 dim 1 : vector<8x128xf32>, i32 -> vector<8x128xf32>
    %52 = arith.mulf %51, %22 : vector<8x128xf32>
    %53 = tpu.concatenate %52, %42, %48 in 0 : vector<8x128xf32>, vector<8x128xf32>, vector<8x128xf32> -> vector<24x128xf32>
    %cst_19 = arith.constant dense<0.000000e+00> : vector<8x128xf32>
    %54 = tpu.matmul %49, %53, %cst_19 {dimension_numbers = #tpu.dot_dimension_numbers<[1], [0], [0], [1], [0, 0, 1, 1], [], []>} : vector<8x24xf32>, vector<24x128xf32>, vector<8x128xf32> -> vector<8x128xf32>
    %55 = vector.broadcast %50 : vector<8x1xf32> to vector<8x128xf32>
    %56 = arith.addf %54, %55 : vector<8x128xf32>
    %c0_20 = arith.constant 0 : index
    %c0_21 = arith.constant 0 : index
    %c0_22 = arith.constant 0 : index
    %57 = vector.load %arg6[%c0_20, %c0_21, %c0_22] : memref<1x8x128xf32, #tpu.memory_space<vmem>>, vector<1x8x128xf32>
    %58 = vector.shape_cast %57 : vector<1x8x128xf32> to vector<8x128xf32>
    %59 = vector.shape_cast %56 : vector<8x128xf32> to vector<1x8x128xf32>
    tpu.vector_store %arg6[%c0_20, %c0_21, %c0_22], %59 {strides = array<i32>} : memref<1x8x128xf32, #tpu.memory_space<vmem>>, vector<1x8x128xf32>,
    %c127_i32_23 = arith.constant 127 : i32
    %60 = tpu.dynamic_rotate %42 by %c127_i32_23 dim 1 : vector<8x128xf32>, i32 -> vector<8x128xf32>
    %61 = arith.mulf %60, %26 : vector<8x128xf32>
    %62 = tpu.concatenate %42, %48, %61 in 0 : vector<8x128xf32>, vector<8x128xf32>, vector<8x128xf32> -> vector<24x128xf32>
    %cst_24 = arith.constant dense<0.000000e+00> : vector<8x128xf32>
    %63 = tpu.matmul %49, %62, %cst_24 {dimension_numbers = #tpu.dot_dimension_numbers<[1], [0], [0], [1], [0, 0, 1, 1], [], []>} : vector<8x24xf32>, vector<24x128xf32>, vector<8x128xf32> -> vector<8x128xf32>
    %64 = vector.broadcast %50 : vector<8x1xf32> to vector<8x128xf32>
    %65 = arith.addf %63, %64 : vector<8x128xf32>
    %c0_25 = arith.constant 0 : index
    %c0_26 = arith.constant 0 : index
    %c0_27 = arith.constant 0 : index
    %66 = vector.load %arg7[%c0_25, %c0_26, %c0_27] : memref<1x8x128xf32, #tpu.memory_space<vmem>>, vector<1x8x128xf32>
    %67 = vector.shape_cast %66 : vector<1x8x128xf32> to vector<8x128xf32>
    %68 = vector.shape_cast %65 : vector<8x128xf32> to vector<1x8x128xf32>
    tpu.vector_store %arg7[%c0_25, %c0_26, %c0_27], %68 {strides = array<i32>} : memref<1x8x128xf32, #tpu.memory_space<vmem>>, vector<1x8x128xf32>,
    return
  }
  func.func @transform_0(%arg0: i32) -> (i32, i32, i32) {
    %c0_i32 = arith.constant 0 : i32
    %c0_i32_0 = arith.constant 0 : i32
    %c0_i32_1 = arith.constant 0 : i32
    return %arg0, %c0_i32, %c0_i32_0 : i32, i32, i32
  }
  func.func @transform_1(%arg0: i32) -> (i32, i32) {
    %c0_i32 = arith.constant 0 : i32
    %c0_i32_0 = arith.constant 0 : i32
    %c0_i32_1 = arith.constant 0 : i32
    return %c0_i32, %c0_i32_0 : i32, i32
  }
  func.func @transform_2(%arg0: i32) -> (i32, i32) {
    %c0_i32 = arith.constant 0 : i32
    %c0_i32_0 = arith.constant 0 : i32
    %c0_i32_1 = arith.constant 0 : i32
    return %c0_i32, %c0_i32_0 : i32, i32
  }
  func.func @transform_3(%arg0: i32) -> (i32, i32) {
    %c0_i32 = arith.constant 0 : i32
    %c0_i32_0 = arith.constant 0 : i32
    %c0_i32_1 = arith.constant 0 : i32
    return %c0_i32, %c0_i32_0 : i32, i32
  }
  func.func @transform_4(%arg0: i32) -> (i32, i32) {
    %c0_i32 = arith.constant 0 : i32
    %c0_i32_0 = arith.constant 0 : i32
    %c0_i32_1 = arith.constant 0 : i32
    return %c0_i32, %c0_i32_0 : i32, i32
  }
  func.func @transform_5(%arg0: i32) -> (i32, i32, i32) {
    %c0_i32 = arith.constant 0 : i32
    %c0_i32_0 = arith.constant 0 : i32
    %c0_i32_1 = arith.constant 0 : i32
    return %arg0, %c0_i32, %c0_i32_0 : i32, i32, i32
  }
  func.func @transform_6(%arg0: i32) -> (i32, i32, i32) {
    %c0_i32 = arith.constant 0 : i32
    %c0_i32_0 = arith.constant 0 : i32
    %c0_i32_1 = arith.constant 0 : i32
    return %arg0, %c0_i32, %c0_i32_0 : i32, i32, i32
  }
}

</mosaic_0001>

<bundles_post_ra>
// kernel: tpu_custom_call.1
= control target key start
LH: loop header
LB: loop body
LE: loop exit
PB: predicated region body
PF: predicated region fallthrough
CT: control target
= control target key end

     0   :  { %12 = vsyncpa [#allocation3], 0  ;;  %s709_s0 = inlined_call_operand.vmem [shape: f32[1,8,128], index: 0, kind: input, shape index: {}]   ;;  %s710_s1 = inlined_call_operand.hbm [shape: f32[8,16], index: 1, kind: input, shape index: {}]   ;;  %s711_s2 = inlined_call_operand.hbm [shape: f32[8,16], index: 2, kind: input, shape index: {}]   ;;  %s712_s3 = inlined_call_operand.hbm [shape: f32[8,24], index: 3, kind: input, shape index: {}]   ;;  %s713_s4 = inlined_call_operand.vmem [shape: f32[8,1], index: 4, kind: input, shape index: {}]   ;;  %s714_s5 = inlined_call_operand.hbm [shape: f32[1,8,128], index: 5, kind: output, shape index: {0}]   ;;  %s715_s6 = inlined_call_operand.hbm [shape: f32[1,8,128], index: 6, kind: output, shape index: {1}]  }
   0x1   :  { %13 = vsyncpa [#allocation6], 0 }
   0x2   :  { %14 = vsyncpa [#allocation4], 0 }
   0x3   :  { %15 = vsyncpa [#allocation10], 0  ;;  %s619_s21 = smov [#allocation5]   ;;  %s620_s23 = smov [#allocation2]  }
   0x4   :  { %s34_s22 = sshll.u32 %s619_s21, 4  ;;  %s24_s24 = sshll.u32 %s620_s23, 4  ;;  %s35_s22 = int_to_ptr.vmem [resolvable:$true] %s34_s22  ;;  %s25_s24 = int_to_ptr.vmem [resolvable:$true] %s24_s24 }
   0x5   :  { %s519_s25 = scalar_lea.vmem %s35_s22, 128  ;;  %p524_p1 = scmp.lt.s32.totalorder %s35_s22, %s35_s22 }
   0x6   :  { %p520_p0 = scmp.ne.s32.totalorder %s35_s22, %s519_s25  ;;  %p525_p2 = scmp.lt.s32.totalorder %s519_s25, %s519_s25 }
   0x8   :  { %p526_p3 = por %p525_p2, %p524_p1 }
   0xa   :  { %p527_p4 = pnand %p526_p3, %p520_p0 }
   0xc   :  { %530 = shalt.err (!%p527_p4)
}
   0xd   :  { %37 = dma.hbm_to_vmem [thread:$0]  %s711_s2, 128, %s35_s22, [#allocation6]  }
   0xe   :  { %s539_s28 = scalar_lea.vmem %s25_s24, 128  ;;  %p544_p6 = scmp.lt.s32.totalorder %s25_s24, %s25_s24 }
   0xf   :  { %p540_p5 = scmp.ne.s32.totalorder %s25_s24, %s539_s28  ;;  %p545_p7 = scmp.lt.s32.totalorder %s539_s28, %s539_s28 }
  0x11   :  { %p546_p8 = por %p545_p7, %p544_p6 }
  0x13   :  { %p547_p9 = pnand %p546_p8, %p540_p5 }
  0x15   :  { %550 = shalt.err (!%p547_p9)
}
  0x16   :  { %27 = dma.hbm_to_vmem [thread:$0]  %s710_s1, 128, %s25_s24, [#allocation3]  }
  0x17   :  { %s621_s7 = smov [#allocation7]  }
  0x18   :  { %s44_s8 = sshll.u32 %s621_s7, 4  ;;  %s45_s8 = int_to_ptr.vmem [resolvable:$true] %s44_s8 }
  0x19   :  { %s559_s9 = scalar_lea.vmem %s45_s8, 128  ;;  %p564_p11 = scmp.lt.s32.totalorder %s45_s8, %s45_s8 }
  0x1a   :  { %p560_p10 = scmp.ne.s32.totalorder %s45_s8, %s559_s9  ;;  %p565_p12 = scmp.lt.s32.totalorder %s559_s9, %s559_s9 }
  0x1c   :  { %p566_p13 = por %p565_p12, %p564_p11 }
  0x1e   :  { %p567_p0 = pnand %p566_p13, %p560_p10 }
  0x20   :  { %570 = shalt.err (!%p567_p0)
}
  0x21   :  { %47 = dma.hbm_to_vmem [thread:$0]  %s712_s3, 128, %s45_s8, [#allocation6]  }
  0x22   :  { %611 = dma.done.wait [#allocation3], 128  }
  0x23   :  { %612 = vsyncadd [#allocation3], 4294967168 }
  0x24   :  { %613 = dma.done.wait [#allocation6], 256  }
  0x25   :  { %614 = vsyncadd [#allocation6], 4294967040  ;;  %v622_v0 = vmov 0.0   ;;  %vm623_vm0 = vmmov 0   ;;  %v59_v1 = vld [vmem:[%s709_s0] sm:$0xff]  ;;  %s624_s3 = smov 1   ;;  %v60_v2 = vlaneseq }
  0x26   :  { %460 = vmatprep.subr.mxu0 %v622_v0  ;;  %464 = vmatprep.mubr.msk.f32.mxu0 %vm623_vm0, %v622_v0  ;;  %s625_s12 = smov 127   ;;  %v80_v9 = vld [vmem:[#allocation2] sm:$0xff]  ;;  %vm84_vm3 = vcmask 130048   ;;  %v158_v12 = vld [vmem:[#allocation5] sm:$0xff]  ;;  %v626_v24 = vmov 0   ;;  %v249_v33 = vld [vmem:[#allocation7] sm:$0xff] }
  0x27   :  { %467 = vmatprep.subr.mxu1 %v622_v0  ;;  %471 = vmatprep.mubr.msk.f32.mxu1 %vm623_vm0, %v622_v0  ;;  %v61_v3 = vand.u32 127, %v60_v2  ;;  %v250_v23 = vld [vmem:[%s713_s4] sm:$0xff]  ;;  %vm259_vm4 = vcmask 195584   ;;  %s627_s4 = smov [#allocation8]   ;;  %s628_s15 = smov [#allocation9]  }
  0x28   :  { %81 = vrot.lane.b32.xlu0 %v59_v1, %s624_s3  ;;  %s414_s14 = sshll.u32 %s627_s4, 4  ;;  %s424_s16 = sshll.u32 %s628_s15, 4  ;;  %s415_s14 = int_to_ptr.vmem [resolvable:$true] %s414_s14  ;;  %s425_s16 = int_to_ptr.vmem [resolvable:$true] %s424_s16 }
  0x29   :  { %v66_v4 = vand.u32 15, %v61_v3  ;;  %502 = vset.pattern.permute.xlu0 %v626_v24  ;;  %s571_s17 = scalar_lea.vmem %s415_s14, 128  ;;  %p576_p2 = scmp.lt.s32.totalorder %s415_s14, %s415_s14 }
  0x2a   :  { %p572_p1 = scmp.ne.s32.totalorder %s415_s14, %s571_s17  ;;  %p577_p3 = scmp.lt.s32.totalorder %s571_s17, %s571_s17 }
  0x2b   :  { %vm74_vm1 = vcmp.ne.s32.totalorder %v66_v4, 0  ;;  %vm77_vm2 = vcmp.ne.s32.totalorder %v66_v4, 15 }
  0x2c   :  { %159 = vrot.lane.b32.xlu0 %v59_v1, %s625_s12  ;;  %v438_v5 = vsel %vm74_vm1, 1.0, %v622_v0  ;;  %v439_v8 = vsel %vm77_vm2, 1.0, %v622_v0  ;;  %p578_p4 = por %p577_p3, %p576_p2 }
  0x2e   :  { %p579_p5 = pnand %p578_p4, %p572_p1 }
  0x30   :  { %256 = vperm.xlu0 %502, %v250_v23  }
  0x9a   :  { %v82_v6 = vpop.permute.xlu0 %81 }
  0x9b   :  { %v83_v7 = vmul.f32 %v438_v5, %v82_v6 }
  0x9d   :  { %461 = vmatpush3.msra.mxu0 %v83_v7 }
  0x9e   :  { %462 = vmatprep.subr.mxu0 %v622_v0  ;;  %v160_v10 = vpop.permute.xlu0 %159 }
  0x9f   :  { %v161_v11 = vmul.f32 %v439_v8, %v160_v10  ;;  %463 = vmatpush3.msra.mxu0 %v59_v1 }
  0xa0   :  { %465 = vmatmul.mubr.msk.f32.vlgmr.msra.gmra.mxu0 %vm84_vm3, %v80_v9  ;;  %474 = vmatprep.subr.mxu0 %v622_v0 }
  0xa1   :  { %468 = vmatpush3.msra.mxu1 %v161_v11  ;;  %480 = vmatprep.mubr.msk.f32.mxu0 %vm623_vm0, %v622_v0 }
  0xa2   :  { %469 = vmatprep.subr.mxu1 %v622_v0 }
  0xa3   :  { %470 = vmatpush3.msra.mxu1 %v59_v1 }
  0xa4   :  { %472 = vmatmul.mubr.msk.f32.vlgmr.msra.gmra.mxu1 %vm84_vm3, %v158_v12  ;;  %483 = vmatprep.subr.mxu1 %v622_v0 }
  0xa5   :  { %489 = vmatprep.mubr.msk.f32.mxu1 %vm623_vm0, %v622_v0 }
  0xab   :  { %v257_v34 = vpop.permute.xlu0 %256 }
 0x160   :  { %v154_v13 = vpop.f32.mrf.mxu0 }
 0x161   :  { %v442_v14 = vmul.f32 -1.442695, %v154_v13 }
 0x162   :  { %v466_v15 = vpop.f32.mrf.mxu0 }
 0x163   :  { %503 = vpow2.f32 %v442_v14 }
 0x164   :  { %v231_v16 = vpop.f32.mrf.mxu1 }
 0x165   :  { %v443_v17 = vmul.f32 -1.442695, %v231_v16 }
 0x166   :  { %v473_v18 = vpop.f32.mrf.mxu1 }
 0x167   :  { %505 = vpow2.f32 %v443_v17 }
 0x170   :  { %v504_v19 = vpop.eup %503 }
 0x171   :  { %v238_v20 = vadd.f32 1.0, %v504_v19 }
 0x173   :  { %507 = vrcp.f32 %v238_v20 }
 0x174   :  { %v506_v21 = vpop.eup %505 }
 0x175   :  { %v245_v22 = vadd.f32 1.0, %v506_v21 }
 0x177   :  { %509 = vrcp.f32 %v245_v22 }
 0x180   :  { %v508_v25 = vpop.eup %507 }
 0x181   :  { %v241_v26 = vmul.f32 %v508_v25, %v154_v13 }
 0x183   :  { %334 = vrot.lane.b32.xlu1 %v241_v26, %s625_s12 }
 0x184   :  { %v510_v27 = vpop.eup %509 }
 0x185   :  { %v248_v28 = vmul.f32 %v510_v27, %v231_v16 }
 0x187   :  { %251 = vrot.lane.b32.xlu1 %v248_v28, %s624_s3  ;;  %475 = vmatpush3.msra.mxu0 %v248_v28 }
 0x188   :  { %476 = vmatprep.subr.mxu0 %v622_v0 }
 0x189   :  { %477 = vmatpush3.msra.mxu0 %v241_v26 }
 0x18a   :  { %478 = vmatprep.subr.mxu0 %v622_v0 }
 0x1f5   :  { %v335_v29 = vpop.permute.xlu1 %334 }
 0x1f6   :  { %v336_v30 = vmul.f32 %v439_v8, %v335_v29 }
 0x1f8   :  { %484 = vmatpush3.msra.mxu1 %v336_v30 }
 0x1f9   :  { %485 = vmatprep.subr.mxu1 %v622_v0  ;;  %v252_v31 = vpop.permute.xlu1 %251 }
 0x1fa   :  { %v253_v32 = vmul.f32 %v438_v5, %v252_v31  ;;  %486 = vmatpush3.msra.mxu1 %v248_v28 }
 0x1fb   :  { %487 = vmatprep.subr.mxu1 %v622_v0 }
 0x1fc   :  { %479 = vmatpush3.msra.mxu0 %v253_v32  ;;  %488 = vmatpush3.msra.mxu1 %v241_v26 }
 0x1fd   :  { %481 = vmatmul.mubr.msk.f32.vlgmr.msra.gmra.mxu0 %vm259_vm4, %v249_v33  ;;  %490 = vmatmul.mubr.msk.f32.vlgmr.msra.gmra.mxu1 %vm259_vm4, %v249_v33 }
 0x2bd   :  { %v329_v35 = vpop.f32.mrf.mxu0  ;;  %v403_v36 = vpop.f32.mrf.mxu1 }
 0x2be   :  { %v330_v37 = vadd.f32 %v329_v35, %v257_v34  ;;  %v404_v38 = vadd.f32 %v403_v36, %v257_v34 }
 0x2bf   :  { %v482_v39 = vpop.f32.mrf.mxu0  ;;  %v491_v40 = vpop.f32.mrf.mxu1 }
 0x2c0   :  { %333 = vst [vmem:[#allocation8] sm:$0xff] %v330_v37  ;;  %407 = vst [vmem:[#allocation9] sm:$0xff] %v404_v38 }
 0x2c1   :  { %582 = shalt.err (!%p579_p5)
}
 0x2c2   :  { %417 = dma.vmem_to_hbm [thread:$0]  %s415_s14, 128, %s714_s5, [#allocation4]  }
 0x2c3   :  { %s591_s20 = scalar_lea.vmem %s425_s16, 128  ;;  %p596_p7 = scmp.lt.s32.totalorder %s425_s16, %s425_s16 }
 0x2c4   :  { %p592_p6 = scmp.ne.s32.totalorder %s425_s16, %s591_s20  ;;  %p597_p8 = scmp.lt.s32.totalorder %s591_s20, %s591_s20 }
 0x2c6   :  { %p598_p9 = por %p597_p8, %p596_p7 }
 0x2c8   :  { %p599_p10 = pnand %p598_p9, %p592_p6 }
 0x2ca   :  { %602 = shalt.err (!%p599_p10)
}
 0x2cb   :  { %427 = dma.vmem_to_hbm [thread:$0]  %s425_s16, 128, %s715_s6, [#allocation10]  }
 0x2cc   :  { %615 = dma.done.wait [#allocation4], 128  }
 0x2cd   :  { %616 = vsyncadd [#allocation4], 4294967168 }
 0x2ce   :  { %617 = dma.done.wait [#allocation10], 128  }
 0x2cf   :  { %618 = vsyncadd [#allocation10], 4294967168 }
 0x2d0   :  { %434 = vsyncpa [#allocation3], 1 }
 0x2d1   :  { %435 = vsyncpa [#allocation6], 1 }
 0x2d2   :  { %436 = vsyncpa [#allocation4], 1 }
 0x2d3   :  { %437 = vsyncpa [#allocation10], 1 }

</bundles_post_ra>
